<compile_context>
chip_gen: v5e
topology: v5e:2x2
jax: 0.10.0
libtpu: 0.0.40
codegen_flags: <defaults>
</compile_context>

<pallas_src>
import math

import jax
import jax.numpy as jnp
from jax.experimental import pallas as pl
from jax.experimental.pallas import tpu as pltpu


def _linear_hardsig_kernel(x_ref, w_ref, o_ref):
    # w already carries the 1/6 factor: hardsigmoid(z) = clip(z/6 + 0.5, 0, 1).
    y = jnp.dot(x_ref[...], w_ref[...], preferred_element_type=jnp.float32) + 0.5
    o_ref[...] = jnp.clip(y, 0.0, 1.0).astype(o_ref.dtype)


def _hw_params():
    """Generation-aware tiling budgets (conservative fallbacks if unknown)."""
    kind = ""
    try:
        kind = getattr(jax.devices()[0], "device_kind", "").lower()
    except Exception:
        pass
    if ("v5e" in kind) or ("v5 lite" in kind) or ("v5litepod" in kind):
        # 16 MiB scoped-VMEM default, single TensorCore.
        return {"vmem_budget": 12 << 20, "num_cores": 1, "target_step_bytes": 3 << 20}
    if "v6" in kind:
        # 32 MiB scoped-VMEM default, single TensorCore.
        return {"vmem_budget": 24 << 20, "num_cores": 1, "target_step_bytes": 4 << 20}
    if "v7" in kind:
        # 32 MiB scoped / 64 MiB physical, 2 TensorCores share the parallel axis.
        return {"vmem_budget": 24 << 20, "num_cores": 2, "target_step_bytes": 8 << 20}
    # Unknown: fit the smallest (v5e) scoped-VMEM default.
    return {"vmem_budget": 12 << 20, "num_cores": 1, "target_step_bytes": 3 << 20}


def _round8up(v):
    return max(8, ((v + 7) // 8) * 8)


def _choose_block_rows(R, hbm_bytes_per_row, vmem_bytes_per_row, *,
                       target_step_bytes, vmem_budget, num_cores):
    """Row-tile: as big as the VMEM budget allows / bytes-per-step target asks,
    multiple of 8; even (>=2) step count only when there are 2 TensorCores."""
    if R <= 8:
        return R
    max_rows_vmem = max(8, (vmem_budget // max(vmem_bytes_per_row, 1)) // 8 * 8)
    target_rows = max(8, target_step_bytes // max(hbm_bytes_per_row, 1))
    tr = min(R, target_rows, max_rows_vmem)
    tr = max(8, (tr // 8) * 8)
    steps = pl.cdiv(R, tr)
    if num_cores >= 2:
        if steps == 1 and R >= 16:
            steps = 2
            tr = min(tr, _round8up(pl.cdiv(R, steps)))
        elif steps > 1 and steps % 2 == 1:
            steps += 1
            tr = min(tr, _round8up(pl.cdiv(R, steps)))
    return tr


def _folded_call(x2, w_scaled_t, fold, out_dtype):
    """x2: (Mm, K) with Mm % fold == 0.  Returns (Mm, N)."""
    Mm, K = x2.shape
    N = w_scaled_t.shape[1]
    R = Mm // fold

    x_r = x2.reshape(R, fold * K)                                   # free row-major reshape
    w_big = jnp.kron(jnp.eye(fold, dtype=w_scaled_t.dtype), w_scaled_t)  # (fold*K, fold*N)

    hw = _hw_params()
    itemsize_in = x2.dtype.itemsize
    itemsize_out = jnp.dtype(out_dtype).itemsize
    hbm_bytes_per_row = fold * K * itemsize_in + fold * N * itemsize_out
    # VMEM per folded row, double-buffered, with lane padding to 128.
    x_row_vmem = pl.cdiv(fold * K, 128) * 128 * itemsize_in
    o_row_vmem = pl.cdiv(fold * N, 128) * 128 * itemsize_out
    vmem_bytes_per_row = 2 * (x_row_vmem + o_row_vmem)

    tr = _choose_block_rows(R, hbm_bytes_per_row, vmem_bytes_per_row,
                            target_step_bytes=hw["target_step_bytes"],
                            vmem_budget=hw["vmem_budget"],
                            num_cores=hw["num_cores"])
    grid = (pl.cdiv(R, tr),)

    cost = pl.CostEstimate(
        flops=2 * Mm * K * N,
        transcendentals=0,
        bytes_accessed=Mm * K * itemsize_in + Mm * N * itemsize_out
        + w_big.size * w_big.dtype.itemsize,
    )

    out_r = pl.pallas_call(
        _linear_hardsig_kernel,
        out_shape=jax.ShapeDtypeStruct((R, fold * N), out_dtype),
        grid_spec=pltpu.PrefetchScalarGridSpec(
            num_scalar_prefetch=0,
            grid=grid,
            in_specs=[
                pl.BlockSpec((tr, fold * K), lambda i: (i, 0)),        # x row tile
                pl.BlockSpec((fold * K, fold * N), lambda i: (0, 0)),  # resident weight
            ],
            out_specs=pl.BlockSpec((tr, fold * N), lambda i: (i, 0)),  # lane-dense out
        ),
        compiler_params=pltpu.CompilerParams(dimension_semantics=("parallel",)),
        cost_estimate=cost,
    )(x_r, w_big)

    return out_r.reshape(Mm, N)


def linear_hardsigmoid(x, weight, *, out_dtype=None):
    """x: (..., K) float32, weight: (N, K) float32 (PyTorch Linear layout, no bias).

    Computes clamp(x @ W.T + 3, 0, 6) / 6.
    `out_dtype=jnp.bfloat16` halves output HBM traffic if the consumer allows it.
    """
    K = x.shape[-1]
    N = weight.shape[0]
    lead = x.shape[:-1]
    M = math.prod(lead) if lead else 1
    out_dtype = x.dtype if out_dtype is None else out_dtype

    x2 = x.reshape(M, K)
    # Fold the hardsigmoid 1/6 into the weight (one-time tiny host-side prep).
    w_scaled_t = (weight.T * (1.0 / 6.0)).astype(weight.dtype)      # (K, N)

    FOLD = 32
    M_main = (M // FOLD) * FOLD

    parts = []
    if M_main > 0:
        parts.append(_folded_call(x2[:M_main], w_scaled_t, FOLD, out_dtype))
    if M_main < M:
        # <=31-row tail: pad only the tail rows up to one fold and reuse the
        # same lane-dense kernel (avoids the masked-8-lane-store fold=1 cliff).
        t = M - M_main
        x_tail = jnp.zeros((FOLD, K), x2.dtype).at[:t].set(x2[M_main:])
        parts.append(_folded_call(x_tail, w_scaled_t, FOLD, out_dtype)[:t])

    out2 = parts[0] if len(parts) == 1 else jnp.concatenate(parts, axis=0)
    return out2.reshape(*lead, N)


if __name__ == "__main__":
    key = jax.random.PRNGKey(0)
    kx, kw, ks = jax.random.split(key, 3)

    # Small shapes consistent with the module: batch=2, spatial=16x16, in=3, out=8
    # (channels-last so Linear(3, 8) contracts the last axis of size 3).
    B, H, W, CIN, COUT = 2, 16, 16, 3, 8
    x1 = jax.random.normal(kx, (B, H, W, CIN), dtype=jnp.float32)

    # Deterministic Linear weight (PyTorch layout: (out_features, in_features)).
    bound = 1.0 / math.sqrt(CIN)
    weight = jax.random.uniform(kw, (COUT, CIN), minval=-bound, maxval=bound,
                                dtype=jnp.float32)

    out = jax.block_until_ready(linear_hardsigmoid(x1, weight))
    ref = jnp.clip(x1 @ weight.T + 3.0, 0.0, 6.0) / 6.0
    assert out.shape == (B, H, W, COUT)
    assert jnp.allclose(out, ref, atol=1e-5, rtol=1e-5), float(jnp.max(jnp.abs(out - ref)))

    # Ragged shape (M not divisible by 32): exercises the main + padded-tail split.
    x_sm = jax.random.normal(ks, (5, 7, CIN), dtype=jnp.float32)
    out_sm = jax.block_until_ready(linear_hardsigmoid(x_sm, weight))
    ref_sm = jnp.clip(x_sm @ weight.T + 3.0, 0.0, 6.0) / 6.0
    assert out_sm.shape == (5, 7, COUT)
    assert jnp.allclose(out_sm, ref_sm, atol=1e-5, rtol=1e-5), \
        float(jnp.max(jnp.abs(out_sm - ref_sm)))

    print("KERNEL_OK")
</pallas_src>

<mosaic_0001>
module attributes {stable_mosaic.version = 11 : i64} {
  func.func @_linear_hardsig_kernel(%arg0: i32, %arg1: memref<16x96xf32, #tpu.memory_space<vmem>>, %arg2: memref<96x256xf32, #tpu.memory_space<vmem>>, %arg3: memref<16x256xf32, #tpu.memory_space<vmem>>) attributes {dimension_semantics = [#tpu.dimension_semantics<parallel>], iteration_bounds = array<i64: 1>, scalar_prefetch = 0 : i64, scratch_operands = 0 : i64, tpu.core_type = #tpu.core_type<tc>, window_params = [{transform_indices = @transform_0, window_bounds = array<i64: 16, 96>}, {pipeline_mode = #tpu.pipeline_mode<synchronous>, transform_indices = @transform_1, window_bounds = array<i64: 96, 256>}, {transform_indices = @transform_2, window_bounds = array<i64: 16, 256>}]} {
    %c0 = arith.constant 0 : index
    %c0_0 = arith.constant 0 : index
    %0 = vector.load %arg1[%c0, %c0_0] : memref<16x96xf32, #tpu.memory_space<vmem>>, vector<16x96xf32>
    %c0_1 = arith.constant 0 : index
    %c0_2 = arith.constant 0 : index
    %1 = vector.load %arg2[%c0_1, %c0_2] : memref<96x256xf32, #tpu.memory_space<vmem>>, vector<96x256xf32>
    %cst = arith.constant dense<0.000000e+00> : vector<16x256xf32>
    %2 = tpu.matmul %0, %1, %cst {dimension_numbers = #tpu.dot_dimension_numbers<[1], [0], [0], [1], [0, 0, 1, 1], [], []>} : vector<16x96xf32>, vector<96x256xf32>, vector<16x256xf32> -> vector<16x256xf32>
    %cst_3 = arith.constant 5.000000e-01 : f32
    %3 = vector.broadcast %cst_3 : f32 to vector<16x256xf32>
    %4 = arith.addf %2, %3 : vector<16x256xf32>
    %cst_4 = arith.constant 0.000000e+00 : f32
    %cst_5 = arith.constant 1.000000e+00 : f32
    %5 = vector.broadcast %cst_4 : f32 to vector<16x256xf32>
    %6 = arith.maximumf %5, %4 : vector<16x256xf32>
    %7 = vector.broadcast %cst_5 : f32 to vector<16x256xf32>
    %8 = arith.minimumf %7, %6 : vector<16x256xf32>
    %c0_6 = arith.constant 0 : index
    %c0_7 = arith.constant 0 : index
    %9 = vector.load %arg3[%c0_6, %c0_7] : memref<16x256xf32, #tpu.memory_space<vmem>>, vector<16x256xf32>
    tpu.vector_store %arg3[%c0_6, %c0_7], %8 {strides = array<i32>} : memref<16x256xf32, #tpu.memory_space<vmem>>, vector<16x256xf32>,
    return
  }
  func.func @transform_0(%arg0: i32) -> (i32, i32) {
    %c0_i32 = arith.constant 0 : i32
    %c0_i32_0 = arith.constant 0 : i32
    return %arg0, %c0_i32 : i32, i32
  }
  func.func @transform_1(%arg0: i32) -> (i32, i32) {
    %c0_i32 = arith.constant 0 : i32
    %c0_i32_0 = arith.constant 0 : i32
    %c0_i32_1 = arith.constant 0 : i32
    return %c0_i32, %c0_i32_0 : i32, i32
  }
  func.func @transform_2(%arg0: i32) -> (i32, i32) {
    %c0_i32 = arith.constant 0 : i32
    %c0_i32_0 = arith.constant 0 : i32
    return %arg0, %c0_i32 : i32, i32
  }
}

</mosaic_0001>

<bundles_post_ra>
// kernel: tpu_custom_call.1
= control target key start
LH: loop header
LB: loop body
LE: loop exit
PB: predicated region body
PF: predicated region fallthrough
CT: control target
= control target key end

     0   :  { %7 = vsyncpa [#allocation3], 0  ;;  %s305_s0 = inlined_call_operand.hbm [shape: f32[16,96], index: 0, kind: input, shape index: {}]   ;;  %s306_s1 = inlined_call_operand.hbm [shape: f32[96,256], index: 1, kind: input, shape index: {}]   ;;  %s307_s2 = inlined_call_operand.hbm [shape: f32[16,256], index: 2, kind: output, shape index: {}]  }
   0x1   :  { %8 = vsyncpa [#allocation6], 0 }
   0x2   :  { %9 = vsyncpa [#allocation4], 0  ;;  %s14_s11 = sshll.u32 %s305_s0, 4  ;;  %s268_s12 = smov [#allocation2]   ;;  %s15_s11 = int_to_ptr.hbm [resolvable:$true] %s14_s11 }
   0x3   :  { %s16_s13 = sshll.u32 %s268_s12, 4  ;;  %s27_s16 = sshll.u32 %s306_s1, 4  ;;  %s17_s13 = int_to_ptr.vmem [resolvable:$true] %s16_s13  ;;  %s28_s16 = int_to_ptr.hbm [resolvable:$true] %s27_s16 }
   0x4   :  { %s269_s17 = smov 128   ;;  %s270_s18 = smov 8  }
   0x5   :  { %22 = dma.hbm_to_vmem [thread:$0]  %s15_s11, 256, %s17_s13, [#allocation3], %s269_s17, %s269_s17, %s270_s18  }
   0x6   :  { %s271_s19 = smov [#allocation5]   ;;  %s272_s21 = smov 256  }
   0x7   :  { %s29_s20 = sshll.u32 %s271_s19, 4  ;;  %s273_s22 = smov 16   ;;  %s30_s20 = int_to_ptr.vmem [resolvable:$true] %s29_s20 }
   0x8   :  { %35 = dma.hbm_to_vmem [thread:$0]  %s28_s16, 3072, %s30_s20, [#allocation6], %s272_s21, %s272_s21, %s273_s22  }
   0x9   :  { %262 = dma.done.wait [#allocation3], 256  }
   0xa   :  { %263 = vsyncadd [#allocation3], 4294967040 }
   0xb   :  { %264 = dma.done.wait [#allocation6], 3072  }
   0xc   :  { %265 = vsyncadd [#allocation6], 4294964224  ;;  %v68_v0 = vld [vmem:[#allocation5 + $0xb0] sm:$0xff]  ;;  %v69_v1 = vld [vmem:[#allocation5 + $0xb8] sm:$0xff]  ;;  %vm70_vm0 = vcmask 785408   ;;  %s274_s0 = smov [#allocation7]  }
   0xd   :  { %v66_v2 = vld [vmem:[#allocation5 + $0xa0] sm:$0xff]  ;;  %159 = vmatpush.msra.mxu2 %v68_v0  ;;  %171 = vmatpush.msra.mxu3 %v69_v1  ;;  %v67_v3 = vld [vmem:[#allocation5 + $0xa8] sm:$0xff]  ;;  %v64_v4 = vld [vmem:[#allocation5 + $0x90] sm:$0xff]  ;;  %s139_s1 = sshll.u32 %s274_s0, 4  ;;  %s141_s25 = sshll.u32 %s307_s2, 4  ;;  %s140_s1 = int_to_ptr.vmem [resolvable:$true] %s139_s1  ;;  %s142_s25 = int_to_ptr.hbm [resolvable:$true] %s141_s25 }
   0xe   :  { %v65_v5 = vld [vmem:[#allocation5 + $0x98] sm:$0xff]  ;;  %81 = vmatpush.msra.mxu0 %v68_v0  ;;  %104 = vmatpush.msra.mxu1 %v69_v1  ;;  %v62_v6 = vld [vmem:[#allocation5 + $0x80] sm:$0xff]  ;;  %v63_v7 = vld [vmem:[#allocation5 + $0x88] sm:$0xff] }
   0xf   :  { %160 = vmatpush.msra.mxu2 %v66_v2  ;;  %172 = vmatpush.msra.mxu3 %v67_v3  ;;  %v60_v8 = vld [vmem:[#allocation5 + $0x70] sm:$0xff]  ;;  %v61_v9 = vld [vmem:[#allocation5 + $0x78] sm:$0xff]  ;;  %v58_v10 = vld [vmem:[#allocation5 + $0x60] sm:$0xff] }
  0x10   :  { %82 = vmatpush.msra.mxu0 %v66_v2  ;;  %105 = vmatpush.msra.mxu1 %v67_v3  ;;  %v59_v11 = vld [vmem:[#allocation5 + $0x68] sm:$0xff]  ;;  %v56_v12 = vld [vmem:[#allocation5 + $0x50] sm:$0xff]  ;;  %v57_v13 = vld [vmem:[#allocation5 + $0x58] sm:$0xff] }
  0x11   :  { %161 = vmatpush.msra.mxu2 %v64_v4  ;;  %173 = vmatpush.msra.mxu3 %v65_v5  ;;  %v54_v14 = vld [vmem:[#allocation5 + $0x40] sm:$0xff]  ;;  %v55_v15 = vld [vmem:[#allocation5 + $0x48] sm:$0xff]  ;;  %v52_v16 = vld [vmem:[#allocation5 + $0x30] sm:$0xff] }
  0x12   :  { %83 = vmatpush.msra.mxu0 %v64_v4  ;;  %106 = vmatpush.msra.mxu1 %v65_v5  ;;  %v53_v17 = vld [vmem:[#allocation5 + $0x38] sm:$0xff]  ;;  %v50_v18 = vld [vmem:[#allocation5 + $0x20] sm:$0xff]  ;;  %v51_v19 = vld [vmem:[#allocation5 + $0x28] sm:$0xff] }
  0x13   :  { %162 = vmatpush.msra.mxu2 %v62_v6  ;;  %174 = vmatpush.msra.mxu3 %v63_v7  ;;  %v48_v20 = vld [vmem:[#allocation5 + $0x10] sm:$0xff]  ;;  %v49_v21 = vld [vmem:[#allocation5 + $0x18] sm:$0xff]  ;;  %v46_v22 = vld [vmem:[#allocation5] sm:$0xff] }
  0x14   :  { %84 = vmatpush.msra.mxu0 %v62_v6  ;;  %107 = vmatpush.msra.mxu1 %v63_v7  ;;  %v47_v23 = vld [vmem:[#allocation5 + $0x8] sm:$0xff]  ;;  %v45_v24 = vld [vmem:[#allocation2 + $0x8] sm:$0xff]  ;;  %v44_v25 = vld [vmem:[#allocation2] sm:$0xff] }
  0x15   :  { %163 = vmatpush.msra.mxu2 %v60_v8  ;;  %175 = vmatpush.msra.mxu3 %v61_v9 }
  0x16   :  { %85 = vmatpush.msra.mxu0 %v60_v8  ;;  %108 = vmatpush.msra.mxu1 %v61_v9 }
  0x17   :  { %164 = vmatpush.msra.mxu2 %v58_v10  ;;  %176 = vmatpush.msra.mxu3 %v59_v11 }
  0x18   :  { %86 = vmatpush.msra.mxu0 %v58_v10  ;;  %109 = vmatpush.msra.mxu1 %v59_v11 }
  0x19   :  { %165 = vmatpush.msra.mxu2 %v56_v12  ;;  %177 = vmatpush.msra.mxu3 %v57_v13 }
  0x1a   :  { %87 = vmatpush.msra.mxu0 %v56_v12  ;;  %110 = vmatpush.msra.mxu1 %v57_v13 }
  0x1b   :  { %166 = vmatpush.msra.mxu2 %v54_v14  ;;  %178 = vmatpush.msra.mxu3 %v55_v15 }
  0x1c   :  { %88 = vmatpush.msra.mxu0 %v54_v14  ;;  %111 = vmatpush.msra.mxu1 %v55_v15 }
  0x1d   :  { %167 = vmatpush.msra.mxu2 %v52_v16  ;;  %179 = vmatpush.msra.mxu3 %v53_v17 }
  0x1e   :  { %89 = vmatpush.msra.mxu0 %v52_v16  ;;  %112 = vmatpush.msra.mxu1 %v53_v17 }
  0x1f   :  { %168 = vmatpush.msra.mxu2 %v50_v18  ;;  %180 = vmatpush.msra.mxu3 %v51_v19 }
  0x20   :  { %90 = vmatpush.msra.mxu0 %v50_v18  ;;  %113 = vmatpush.msra.mxu1 %v51_v19 }
  0x21   :  { %169 = vmatpush.msra.mxu2 %v48_v20  ;;  %181 = vmatpush.msra.mxu3 %v49_v21 }
  0x22   :  { %91 = vmatpush.msra.mxu0 %v48_v20  ;;  %114 = vmatpush.msra.mxu1 %v49_v21 }
  0x23   :  { %170 = vmatpush.msra.mxu2 %v46_v22  ;;  %182 = vmatpush.msra.mxu3 %v47_v23 }
  0x24   :  { %156 = vmatmul.msk.f32.vlgmr.msra.gmra.mxu2 %vm70_vm0, %v45_v24  ;;  %158 = vmatmul.msk.f32.vlgmr.msra.gmra.mxu3 %vm70_vm0, %v45_v24 }
  0x25   :  { %92 = vmatpush.msra.mxu0 %v46_v22  ;;  %115 = vmatpush.msra.mxu1 %v47_v23 }
  0x26   :  { %155 = vmatmul.msk.f32.vlgmr.msra.gmra.mxu0 %vm70_vm0, %v44_v25  ;;  %157 = vmatmul.msk.f32.vlgmr.msra.gmra.mxu1 %vm70_vm0, %v44_v25 }
  0xa3   :  { %v94_v26 = vpop.f32.mrf.mxu0  ;;  %v117_v27 = vpop.f32.mrf.mxu1 }
  0xa4   :  { %v95_v28 = vadd.f32 0.5, %v94_v26  ;;  %v118_v29 = vadd.f32 0.5, %v117_v27 }
  0xa6   :  { %v123_v30 = vmax.f32 %v95_v28, 0.0  ;;  %v124_v31 = vmax.f32 %v118_v29, 0.0 }
  0xa7   :  { %v97_v32 = vpop.f32.mrf.mxu2  ;;  %v120_v33 = vpop.f32.mrf.mxu3 }
  0xa8   :  { %v127_v34 = vmin.f32 %v123_v30, 1.0  ;;  %v98_v35 = vadd.f32 0.5, %v97_v32  ;;  %v128_v36 = vmin.f32 %v124_v31, 1.0  ;;  %v121_v37 = vadd.f32 0.5, %v120_v33 }
  0xaa   :  { %131 = vst [vmem:[#allocation7] sm:$0xff] %v127_v34  ;;  %v125_v38 = vmax.f32 %v98_v35, 0.0  ;;  %v126_v39 = vmax.f32 %v121_v37, 0.0 }
  0xab   :  { %132 = vst [vmem:[#allocation7 + $0x8] sm:$0xff] %v128_v36 }
  0xac   :  { %v129_v40 = vmin.f32 %v125_v38, 1.0  ;;  %v130_v41 = vmin.f32 %v126_v39, 1.0 }
  0xae   :  { %133 = vst [vmem:[#allocation7 + $0x10] sm:$0xff] %v129_v40 }
  0xaf   :  { %134 = vst [vmem:[#allocation7 + $0x18] sm:$0xff] %v130_v41 }
  0xb0   :  { %147 = dma.vmem_to_hbm [thread:$0]  %s140_s1, 512, %s142_s25, [#allocation4], %s272_s21, %s272_s21, %s273_s22  }
  0xb1   :  { %266 = dma.done.wait [#allocation4], 512  }
  0xb2   :  { %267 = vsyncadd [#allocation4], 4294966784 }
  0xb3   :  { %152 = vsyncpa [#allocation3], 1 }
  0xb4   :  { %153 = vsyncpa [#allocation6], 1 }
  0xb5   :  { %154 = vsyncpa [#allocation4], 1 }

</bundles_post_ra>
